<compile_context>
chip_gen: v7x
topology: tpu7x:2x2x1
jax: 0.10.0
libtpu: 0.0.40
codegen_flags: <defaults>
</compile_context>

<pallas_src>
import jax
import jax.numpy as jnp
import numpy as np
from jax.experimental import pallas as pl
from jax.experimental.pallas import tpu as pltpu


def _round_up(x, m):
    return ((x + m - 1) // m) * m


def _dist_linear_kernel(x_ref, vt_ref, rs_ref, cs_ref, o_ref, acc_ref):
    k = pl.program_id(2)

    @pl.when(k == 0)
    def _init():
        acc_ref[...] = jnp.zeros_like(acc_ref)

    # Plain (tm, tk) @ (tk, tn) MXU contraction (weight pre-transposed once in
    # the prepare step, so no in-kernel transpose); f32 accumulation in VMEM.
    acc_ref[...] += jnp.dot(x_ref[...], vt_ref[...],
                            preferred_element_type=jnp.float32)

    @pl.when(k == pl.num_programs(2) - 1)
    def _finalize():
        # row_scale = 1/(||x||+eps), col_scale = scale_factor * g / ||v||_row.
        o_ref[...] = (acc_ref[...] * rs_ref[...] * cs_ref[...]).astype(o_ref.dtype)


def dist_linear_prepare(v, g, *, scale_factor=None, tn=1024, tk=512,
                        compute_dtype=jnp.bfloat16):
    """One-off weight preparation (the torch module's __init__ / WeightNorm state).

    Call once per optimizer step (or once at inference); dist_linear_forward then
    streams the weight exactly once from HBM per call.
    """
    outdim, indim = v.shape
    if scale_factor is None:
        scale_factor = 2 if outdim <= 200 else 10

    tn = min(tn, _round_up(outdim, 128))
    tk = min(tk, _round_up(indim, 128))
    N, K = _round_up(outdim, tn), _round_up(indim, tk)

    v32 = v.astype(jnp.float32)
    v_norm = jnp.sqrt(jnp.sum(v32 * v32, axis=1))                       # (outdim,)
    col_scale = (float(scale_factor)
                 * g.reshape(outdim).astype(jnp.float32) / v_norm)      # (outdim,)

    # Pre-transposed, zero-padded, compute-dtype weight (K, N).  Padded columns
    # get col_scale == 0 and are sliced off after the kernel.
    vt = jnp.pad(v.astype(compute_dtype).T, ((0, K - indim), (0, N - outdim)))
    cs = jnp.pad(col_scale[None, :], ((0, 0), (0, N - outdim)))          # (1, N) f32

    return dict(vt=vt, cs=cs, outdim=outdim, indim=indim,
                tn=tn, tk=tk, compute_dtype=compute_dtype)


def dist_linear_forward(params, x, *, eps=1e-5, tm=1024):
    """scale_factor * (x / (||x||+eps)) @ (g * v / ||v||_row)^T via Pallas."""
    B, indim = x.shape
    assert indim == params["indim"], "indim mismatch with prepared weights"
    vt, cs = params["vt"], params["cs"]
    tn, tk = params["tn"], params["tk"]
    cdtype = params["compute_dtype"]
    K, N = vt.shape
    out_dtype = x.dtype

    tm = min(tm, _round_up(B, 8))
    M = _round_up(B, tm)

    # If the whole problem is a single (M, N) tile, split N so both v7x
    # TensorCores get a "parallel" tile (no effect on single-TC v5e/v6e).
    if M // tm == 1 and N // tn == 1 and tn % 256 == 0:
        tn //= 2

    # Pad/cast x once; XLA fuses the per-row norm reduction into the same pass
    # over x, so the (M, 1) epilogue vector costs no extra HBM traffic.  The
    # normalisation multiply itself still happens inside the kernel epilogue.
    x32 = jnp.pad(x.astype(jnp.float32), ((0, M - B), (0, K - indim)))
    row_scale = 1.0 / (jnp.sqrt(jnp.sum(x32 * x32, axis=1, keepdims=True)) + eps)
    x_p = x32.astype(cdtype)

    grid = (M // tm, N // tn, K // tk)

    itm = jnp.dtype(cdtype).itemsize
    out_itm = jnp.dtype(out_dtype).itemsize
    # Double-buffered x / v^T / out tiles + f32 accumulator + tiny scale vectors.
    vmem_bytes = (2 * tm * tk * itm + 2 * tk * tn * itm
                  + 2 * tm * tn * out_itm
                  + tm * tn * 4
                  + 4 * (tm + tn) * 4)
    # Raise the scoped VMEM limit above v5e's 16 MiB default; keep well under
    # v7x's 64 MiB physical VMEM.
    vmem_limit = int(min(max(vmem_bytes + (16 << 20), 32 << 20), 60 << 20))

    out = pl.pallas_call(
        _dist_linear_kernel,
        out_shape=jax.ShapeDtypeStruct((M, N), out_dtype),
        grid_spec=pltpu.PrefetchScalarGridSpec(
            num_scalar_prefetch=0,
            grid=grid,
            in_specs=[
                pl.BlockSpec((tm, tk), lambda i, j, k: (i, k)),   # x tile
                pl.BlockSpec((tk, tn), lambda i, j, k: (k, j)),   # v^T tile
                pl.BlockSpec((tm, 1), lambda i, j, k: (i, 0)),    # row scale
                pl.BlockSpec((1, tn), lambda i, j, k: (0, j)),    # col scale
            ],
            out_specs=pl.BlockSpec((tm, tn), lambda i, j, k: (i, j)),
            scratch_shapes=[pltpu.VMEM((tm, tn), jnp.float32)],   # f32 accumulator
        ),
        compiler_params=pltpu.CompilerParams(
            dimension_semantics=("parallel", "parallel", "arbitrary"),
            vmem_limit_bytes=vmem_limit,
        ),
        cost_estimate=pl.CostEstimate(
            flops=2 * M * N * K,
            transcendentals=0,
            # Actual streamed traffic: x re-read once per N tile, v^T re-read
            # once per M tile, plus the scale vectors and the output write.
            bytes_accessed=int((N // tn) * M * K * itm
                               + (M // tm) * K * N * itm
                               + (N // tn) * M * 4
                               + (M // tm) * N * 4
                               + M * N * out_itm),
        ),
    )(x_p, vt, row_scale, cs)

    return out[:B, :params["outdim"]]


def dist_linear_ref(x, v, g, *, scale_factor, eps=1e-5):
    x = x.astype(jnp.float32)
    x_n = x / (jnp.linalg.norm(x, axis=1, keepdims=True) + eps)
    v32 = v.astype(jnp.float32)
    w = g.reshape(-1, 1) * v32 / jnp.linalg.norm(v32, axis=1, keepdims=True)
    return scale_factor * (x_n @ w.T)


if __name__ == "__main__":
    key = jax.random.PRNGKey(0)

    cases = [
        # Case 1: tiny head, single grid point, f32 compute path (tight tol).
        dict(B=8, indim=32, outdim=16, cdtype=jnp.float32,
             tm=1024, tn=1024, tk=512, rtol=1e-4, atol=1e-4),
        # Case 2: small tiles -> full (M, N, K) grid, K accumulation, padded
        #         output columns, bf16 compute path.
        dict(B=16, indim=256, outdim=160, cdtype=jnp.bfloat16,
             tm=8, tn=128, tk=128, rtol=2e-2, atol=2e-2),
        # Case 3: single-(M,N)-tile problem -> exercises the dual-TensorCore
        #         N split (tn 512 -> 256) and scale_factor=10 branch.
        dict(B=32, indim=512, outdim=512, cdtype=jnp.bfloat16,
             tm=1024, tn=1024, tk=512, rtol=2e-2, atol=5e-2),
    ]

    for c in cases:
        B, indim, outdim = c["B"], c["indim"], c["outdim"]
        scale_factor = 2 if outdim <= 200 else 10

        key, kx, kv = jax.random.split(key, 3)
        x = jax.random.normal(kx, (B, indim), dtype=jnp.float32)
        # nn.Linear init: uniform in [-1/sqrt(indim), 1/sqrt(indim)].
        bound = 1.0 / np.sqrt(indim)
        v = jax.random.uniform(kv, (outdim, indim), dtype=jnp.float32,
                               minval=-bound, maxval=bound)
        # WeightNorm.apply initializes g = ||v||_row, so W_eff == v at init.
        g = jnp.linalg.norm(v, axis=1, keepdims=True)

        params = dist_linear_prepare(v, g, scale_factor=scale_factor,
                                     tn=c["tn"], tk=c["tk"],
                                     compute_dtype=c["cdtype"])
        out = dist_linear_forward(params, x, tm=c["tm"])
        out = jax.block_until_ready(out)

        ref = dist_linear_ref(x, v, g, scale_factor=scale_factor)
        np.testing.assert_allclose(np.asarray(out, dtype=np.float32),
                                   np.asarray(ref),
                                   rtol=c["rtol"], atol=c["atol"])

    print("KERNEL_OK")
</pallas_src>

<mosaic_0001>
module attributes {stable_mosaic.version = 11 : i64} {
  func.func @_dist_linear_kernel(%arg0: i32, %arg1: i32, %arg2: i32, %arg3: memref<8x128xf32, #tpu.memory_space<vmem>>, %arg4: memref<128x128xf32, #tpu.memory_space<vmem>>, %arg5: memref<8x1xf32, #tpu.memory_space<vmem>>, %arg6: memref<1x128xf32, #tpu.memory_space<vmem>>, %arg7: memref<8x128xf32, #tpu.memory_space<vmem>>, %arg8: memref<8x128xf32, #tpu.memory_space<vmem>>) attributes {dimension_semantics = [#tpu.dimension_semantics<parallel>, #tpu.dimension_semantics<parallel>, #tpu.dimension_semantics<arbitrary>], iteration_bounds = array<i64: 1, 1, 1>, scalar_prefetch = 0 : i64, scratch_operands = 1 : i64, tpu.core_type = #tpu.core_type<tc>, window_params = [{transform_indices = @transform_0, window_bounds = array<i64: 8, 128>}, {transform_indices = @transform_1, window_bounds = array<i64: 128, 128>}, {transform_indices = @transform_2, window_bounds = array<i64: 8, 1>}, {transform_indices = @transform_3, window_bounds = array<i64: 1, 128>}, {transform_indices = @transform_4, window_bounds = array<i64: 8, 128>}]} {
    %c0_i32 = arith.constant 0 : i32
    %0 = arith.cmpi eq, %arg2, %c0_i32 : i32
    %1 = arith.extui %0 : i1 to i32
    %c0_i32_0 = arith.constant 0 : i32
    %2 = arith.cmpi ne, %1, %c0_i32_0 : i32
    scf.if %2 {
      %cst_10 = arith.constant 0.000000e+00 : f32
      %12 = vector.broadcast %cst_10 : f32 to vector<8x128xf32>
      %c0_11 = arith.constant 0 : index
      %c0_12 = arith.constant 0 : index
      %13 = vector.load %arg8[%c0_11, %c0_12] : memref<8x128xf32, #tpu.memory_space<vmem>>, vector<8x128xf32>
      tpu.vector_store %arg8[%c0_11, %c0_12], %12 {strides = array<i32>} : memref<8x128xf32, #tpu.memory_space<vmem>>, vector<8x128xf32>,
    } else {
    }
    %c0 = arith.constant 0 : index
    %c0_1 = arith.constant 0 : index
    %3 = vector.load %arg8[%c0, %c0_1] : memref<8x128xf32, #tpu.memory_space<vmem>>, vector<8x128xf32>
    %c0_2 = arith.constant 0 : index
    %c0_3 = arith.constant 0 : index
    %4 = vector.load %arg3[%c0_2, %c0_3] : memref<8x128xf32, #tpu.memory_space<vmem>>, vector<8x128xf32>
    %c0_4 = arith.constant 0 : index
    %c0_5 = arith.constant 0 : index
    %5 = vector.load %arg4[%c0_4, %c0_5] : memref<128x128xf32, #tpu.memory_space<vmem>>, vector<128x128xf32>
    %cst = arith.constant dense<0.000000e+00> : vector<8x128xf32>
    %6 = tpu.matmul %4, %5, %cst {dimension_numbers = #tpu.dot_dimension_numbers<[1], [0], [0], [1], [0, 0, 1, 1], [], []>} : vector<8x128xf32>, vector<128x128xf32>, vector<8x128xf32> -> vector<8x128xf32>
    %7 = arith.addf %3, %6 : vector<8x128xf32>
    %c0_6 = arith.constant 0 : index
    %c0_7 = arith.constant 0 : index
    %8 = vector.load %arg8[%c0_6, %c0_7] : memref<8x128xf32, #tpu.memory_space<vmem>>, vector<8x128xf32>
    tpu.vector_store %arg8[%c0_6, %c0_7], %7 {strides = array<i32>} : memref<8x128xf32, #tpu.memory_space<vmem>>, vector<8x128xf32>,
    %c0_i32_8 = arith.constant 0 : i32
    %9 = arith.cmpi eq, %arg2, %c0_i32_8 : i32
    %10 = arith.extui %9 : i1 to i32
    %c0_i32_9 = arith.constant 0 : i32
    %11 = arith.cmpi ne, %10, %c0_i32_9 : i32
    scf.if %11 {
      %c0_10 = arith.constant 0 : index
      %c0_11 = arith.constant 0 : index
      %12 = vector.load %arg8[%c0_10, %c0_11] : memref<8x128xf32, #tpu.memory_space<vmem>>, vector<8x128xf32>
      %c0_12 = arith.constant 0 : index
      %c0_13 = arith.constant 0 : index
      %13 = vector.load %arg5[%c0_12, %c0_13] : memref<8x1xf32, #tpu.memory_space<vmem>>, vector<8x1xf32>
      %14 = vector.broadcast %13 : vector<8x1xf32> to vector<8x128xf32>
      %15 = arith.mulf %12, %14 : vector<8x128xf32>
      %c0_14 = arith.constant 0 : index
      %c0_15 = arith.constant 0 : index
      %16 = vector.load %arg6[%c0_14, %c0_15] : memref<1x128xf32, #tpu.memory_space<vmem>>, vector<1x128xf32>
      %17 = vector.broadcast %16 : vector<1x128xf32> to vector<8x128xf32>
      %18 = arith.mulf %15, %17 : vector<8x128xf32>
      %c0_16 = arith.constant 0 : index
      %c0_17 = arith.constant 0 : index
      %19 = vector.load %arg7[%c0_16, %c0_17] : memref<8x128xf32, #tpu.memory_space<vmem>>, vector<8x128xf32>
      tpu.vector_store %arg7[%c0_16, %c0_17], %18 {strides = array<i32>} : memref<8x128xf32, #tpu.memory_space<vmem>>, vector<8x128xf32>,
    } else {
    }
    return
  }
  func.func @transform_0(%arg0: i32, %arg1: i32, %arg2: i32) -> (i32, i32) {
    %c0_i32 = arith.constant 0 : i32
    return %arg0, %arg2 : i32, i32
  }
  func.func @transform_1(%arg0: i32, %arg1: i32, %arg2: i32) -> (i32, i32) {
    %c0_i32 = arith.constant 0 : i32
    return %arg2, %arg1 : i32, i32
  }
  func.func @transform_2(%arg0: i32, %arg1: i32, %arg2: i32) -> (i32, i32) {
    %c0_i32 = arith.constant 0 : i32
    %c0_i32_0 = arith.constant 0 : i32
    return %arg0, %c0_i32 : i32, i32
  }
  func.func @transform_3(%arg0: i32, %arg1: i32, %arg2: i32) -> (i32, i32) {
    %c0_i32 = arith.constant 0 : i32
    %c0_i32_0 = arith.constant 0 : i32
    return %c0_i32, %arg1 : i32, i32
  }
  func.func @transform_4(%arg0: i32, %arg1: i32, %arg2: i32) -> (i32, i32) {
    %c0_i32 = arith.constant 0 : i32
    return %arg0, %arg1 : i32, i32
  }
}

</mosaic_0001>

<bundles_post_ra>
// kernel: tpu_custom_call.1
= control target key start
LH: loop header
LB: loop body
LE: loop exit
PB: predicated region body
PF: predicated region fallthrough
CT: control target
= control target key end

     0   :  { %9 = vsyncpa [#allocation4], 0  ;;  %s362_s0 = inlined_call_operand.vmem [shape: f32[8,128], index: 0, kind: input, shape index: {}]   ;;  %s363_s1 = inlined_call_operand.hbm [shape: f32[128,128], index: 1, kind: input, shape index: {}]   ;;  %s364_s2 = inlined_call_operand.vmem [shape: f32[8,1], index: 2, kind: input, shape index: {}]   ;;  %s365_s3 = inlined_call_operand.vmem [shape: f32[1,128], index: 3, kind: input, shape index: {}]   ;;  %s366_s4 = inlined_call_operand.hbm [shape: f32[8,128], index: 4, kind: output, shape index: {}]  }
   0x1   :  { %10 = vsyncpa [#allocation5], 0  ;;  %s296_s15 = smov [#allocation3]   ;;  %s248_s19 = scalar_lea.hbm %s363_s1, 2048 }
   0x2   :  { %s18_s16 = sshll.u32 %s296_s15, 4  ;;  %p249_p0 = scmp.ne.s32.totalorder %s363_s1, %s248_s19  ;;  %s19_s16 = int_to_ptr.vmem [resolvable:$true] %s18_s16 }
   0x3   :  { %p252_p1 = scmp.lt.u32.totalorder %s248_s19, %s363_s1 }
   0x5   :  { %p254_p2 = pnand %p252_p1, %p249_p0 }
   0x7   :  { %257 = shalt.err (!%p254_p2)
}
   0x8   :  { %s258_s24 = scalar_lea.vmem %s19_s16, 2048  ;;  %p263_p4 = scmp.lt.s32.totalorder %s19_s16, %s19_s16 }
   0x9   :  { %p259_p3 = scmp.ne.s32.totalorder %s19_s16, %s258_s24  ;;  %p264_p5 = scmp.lt.s32.totalorder %s258_s24, %s258_s24 }
   0xb   :  { %p265_p6 = por %p264_p5, %p263_p4 }
   0xd   :  { %p266_p7 = pnand %p265_p6, %p259_p3 }
   0xf   :  { %269 = shalt.err (!%p266_p7)
}
  0x10   :  { %s297_s25 = smov 128   ;;  %s298_s26 = smov 8  }
  0x11   :  { %24 = dma.hbm_to_vmem [thread:$0]  %s363_s1, 2048, %s19_s16, [#allocation4], %s297_s25, %s297_s25, %s298_s26  }
  0x12   :  { %292 = dma.done.wait [#allocation4], 2048  }
  0x13   :  { %293 = vsyncadd [#allocation4], 4294965248  ;;  %v299_v0 = vmov 0.0|0.0   ;;  %vm300_vm0 = vmmov 0   ;;  %v301_v1 = vmov 0.0   ;;  %v302_v2 = vmov 0  }
  0x14   :  { %215 = vmatprep.subr.bf16.mxu0 %v299_v0  ;;  %212 = vmatprep.mubr.msk.f32.mxu0 %vm300_vm0, %v301_v1  ;;  %v39_v3 = vld [vmem:[#allocation3] sm:$0xff]  ;;  %v40_v4 = vld [vmem:[#allocation3 + $0x8] sm:$0xff]  ;;  %v41_v5 = vld [vmem:[#allocation3 + $0x10] sm:$0xff]  ;;  %s303_s7 = smov [#allocation6]  }
  0x15   :  { %247 = vset.pattern.permute.xlu0 %v302_v2  ;;  %v216_v6 = vpack.c.bf16 %v40_v4, %v39_v3  ;;  %v42_v7 = vld [vmem:[#allocation3 + $0x18] sm:$0xff]  ;;  %v43_v9 = vld [vmem:[#allocation3 + $0x20] sm:$0xff]  ;;  %v44_v10 = vld [vmem:[#allocation3 + $0x28] sm:$0xff]  ;;  %s153_s8 = sshll.u32 %s303_s7, 4  ;;  %s154_s8 = int_to_ptr.vmem [resolvable:$true] %s153_s8 }
  0x16   :  { %v219_v8 = vpack.c.bf16 %v42_v7, %v41_v5  ;;  %v131_v11 = vld [vmem:[%s364_s2] sm:$0xff]  ;;  %v222_v12 = vpack.c.bf16 %v44_v10, %v43_v9  ;;  %v45_v13 = vld [vmem:[#allocation3 + $0x30] sm:$0xff]  ;;  %v46_v14 = vld [vmem:[#allocation3 + $0x38] sm:$0xff]  ;;  %s270_s9 = scalar_lea.vmem %s154_s8, 128  ;;  %p275_p9 = scmp.lt.s32.totalorder %s154_s8, %s154_s8 }
  0x17   :  { %217 = vmatpush3.bf16.msra.mxu0 %v216_v6  ;;  %134 = vperm.xlu0 %247, %v131_v11   ;;  %v225_v15 = vpack.c.bf16 %v46_v14, %v45_v13  ;;  %v47_v16 = vld [vmem:[#allocation3 + $0x40] sm:$0xff]  ;;  %v48_v17 = vld [vmem:[#allocation3 + $0x48] sm:$0xff]  ;;  %v49_v19 = vld [vmem:[#allocation3 + $0x50] sm:$0xff]  ;;  %p271_p8 = scmp.ne.s32.totalorder %s154_s8, %s270_s9  ;;  %p276_p10 = scmp.lt.s32.totalorder %s270_s9, %s270_s9 }
  0x18   :  { %218 = vmatprep.subr.bf16.mxu0 %v299_v0  ;;  %v228_v18 = vpack.c.bf16 %v48_v17, %v47_v16  ;;  %v50_v20 = vld [vmem:[#allocation3 + $0x58] sm:$0xff]  ;;  %v51_v22 = vld [vmem:[#allocation3 + $0x60] sm:$0xff]  ;;  %v52_v23 = vld [vmem:[#allocation3 + $0x68] sm:$0xff] }
  0x19   :  { %v231_v21 = vpack.c.bf16 %v50_v20, %v49_v19  ;;  %v234_v24 = vpack.c.bf16 %v52_v23, %v51_v22  ;;  %v53_v25 = vld [vmem:[#allocation3 + $0x70] sm:$0xff]  ;;  %v54_v26 = vld [vmem:[#allocation3 + $0x78] sm:$0xff]  ;;  %v38_v28 = vld [vmem:[%s362_s0] sm:$0xff]  ;;  %p277_p11 = por %p276_p10, %p275_p9 }
  0x1a   :  { %v237_v27 = vpack.c.bf16 %v54_v26, %v53_v25  ;;  %v162_v31 = vld [vmem:[%s365_s3] ss:$0 sm:$0xff] }
  0x1b   :  { %220 = vmatpush3.bf16.msra.mxu0 %v219_v8  ;;  %p278_p12 = pnand %p277_p11, %p271_p8 }
  0x1c   :  { %221 = vmatprep.subr.bf16.mxu0 %v299_v0 }
  0x1f   :  { %223 = vmatpush3.bf16.msra.mxu0 %v222_v12 }
  0x20   :  { %224 = vmatprep.subr.bf16.mxu0 %v299_v0 }
  0x23   :  { %226 = vmatpush3.bf16.msra.mxu0 %v225_v15 }
  0x24   :  { %227 = vmatprep.subr.bf16.mxu0 %v299_v0 }
  0x27   :  { %229 = vmatpush3.bf16.msra.mxu0 %v228_v18 }
  0x28   :  { %230 = vmatprep.subr.bf16.mxu0 %v299_v0 }
  0x2b   :  { %232 = vmatpush3.bf16.msra.mxu0 %v231_v21 }
  0x2c   :  { %233 = vmatprep.subr.bf16.mxu0 %v299_v0 }
  0x2f   :  { %235 = vmatpush3.bf16.msra.mxu0 %v234_v24 }
  0x30   :  { %236 = vmatprep.subr.bf16.mxu0 %v299_v0 }
  0x33   :  { %238 = vmatpush3.bf16.msra.mxu0 %v237_v27 }
  0x36   :  { %213 = vmatmul.mubr.f32.vlgmr.msra.gmra.mrb[0].mxu0 %v38_v28 }
  0x96   :  { %v135_v29 = vpop.permute.xlu0 %134 }
 0x109   :  { %v121_v30 = vpop.f32.mrb[0].mxu0 }
 0x10a   :  { %v137_v32 = vmul.f32 %v135_v29, %v121_v30  ;;  %v214_v33 = vpop.f32.mrb[1].mxu0 }
 0x10c   :  { %v145_v34 = vmul.f32 %v162_v31, %v137_v32 }
 0x10e   :  { %146 = vst [vmem:[#allocation6] sm:$0xff] %v145_v34 }
 0x10f   :  { %281 = shalt.err (!%p278_p12)
}
 0x110   :  { %s282_s11 = scalar_lea.hbm %s366_s4, 128 }
 0x111   :  { %p283_p13 = scmp.ne.s32.totalorder %s366_s4, %s282_s11  ;;  %p286_p0 = scmp.lt.u32.totalorder %s282_s11, %s366_s4 }
 0x113   :  { %p288_p1 = pnand %p286_p0, %p283_p13 }
 0x115   :  { %291 = shalt.err (!%p288_p1)
}
 0x116   :  { %156 = dma.vmem_to_hbm [thread:$0]  %s154_s8, 128, %s366_s4, [#allocation5]  }
 0x117   :  { %294 = dma.done.wait [#allocation5], 128  }
 0x118   :  { %295 = vsyncadd [#allocation5], 4294967168 }
 0x119   :  { %160 = vsyncpa [#allocation4], 1 }
 0x11a   :  { %161 = vsyncpa [#allocation5], 1 }

</bundles_post_ra>
